<compile_context>
chip_gen: v7x
topology: tpu7x:2x2x1
jax: 0.10.0
libtpu: 0.0.40
codegen_flags: <defaults>
</compile_context>

<pallas_src>
import math
from functools import partial

import jax
import jax.numpy as jnp
from jax.experimental import pallas as pl
from jax.experimental.pallas import tpu as pltpu


def _attention_kernel(x_ref, w_ref, b_ref, u_ref, ctx_ref, alphas_ref, *,
                      matmul_dtype):
    # x_ref:      (TB, S, H) tile of lstm_output
    # w_ref:      (H, A)
    # b_ref:      (1, A)
    # u_ref:      (1, A)   -- already divided by sqrt(A) on the host
    # ctx_ref:    (TB, H)
    # alphas_ref: (TB, S)
    TB, S, H = x_ref.shape

    x = x_ref[...]                           # (TB, S, H) float32
    x2 = x.reshape(TB * S, H)                # leading-dim merge (layout-free)

    # v = tanh(x @ w + b); the 1/sqrt(A) scale is folded into u on the host.
    xw = jnp.dot(x2.astype(matmul_dtype), w_ref[...].astype(matmul_dtype),
                 preferred_element_type=jnp.float32)          # (TB*S, A) on MXU
    v = jnp.tanh(xw + b_ref[...])                             # EUP tanh

    # Score vu[b, s] = sum_a v[b, s, a] * (u[a] / sqrt(A))  -> (TB*S, 1)
    vu = jnp.sum(v * u_ref[...], axis=-1, keepdims=True)      # lane (XLU) reduce
    vu = vu.reshape(TB, S, 1)

    # Numerically-stable softmax over the sequence axis (sublane reduces),
    # matching PyTorch's "+ 1e-10" denominator exactly.
    m = jnp.max(vu, axis=1, keepdims=True)                     # (TB, 1, 1)
    e = jnp.exp(vu - m)                                        # (TB, S, 1)
    denom = jnp.sum(e, axis=1, keepdims=True) + 1e-10          # (TB, 1, 1)
    alphas = e * (1.0 / denom)                                 # exact; tiny divide

    # context[b, h] = sum_s alphas[b, s] * x[b, s, h]
    # VPU broadcast-multiply + sublane reduce; avoids an M=1 MXU matmul and
    # any explicit transpose of the score column.
    ctx = jnp.sum(x * alphas, axis=1)                          # (TB, H)

    ctx_ref[...] = ctx.astype(ctx_ref.dtype)
    alphas_ref[...] = alphas.reshape(TB, S).astype(alphas_ref.dtype)


def attention_forward(lstm_output, w_omega, b_omega, u_omega, *,
                      block_batch=None, matmul_dtype=jnp.float32):
    """Pallas implementation of AttentionModule.forward.

    Args:
      lstm_output: [B, S, H] float32
      w_omega:     [H, A]    float32
      b_omega:     [A]       float32
      u_omega:     [A]       float32
      block_batch: batch elements per grid step (auto-sized if None)
      matmul_dtype: dtype for the x @ w_omega MXU matmul (f32 default;
                    jnp.bfloat16 is faster on v6e/v7x for large shapes)
    Returns:
      (context [B, H], alphas [B, S])
    """
    B, S, H = lstm_output.shape
    A = w_omega.shape[1]
    scale = math.sqrt(A)

    x = lstm_output.astype(jnp.float32)
    w2 = w_omega.astype(jnp.float32)
    b2 = b_omega.reshape(1, A).astype(jnp.float32)
    # Fold 1/sqrt(A) into u:  sum(tanh(.)/s * u) == sum(tanh(.) * (u/s)).
    u2 = (u_omega.astype(jnp.float32) / scale).reshape(1, A)

    if block_batch is None:
        # Batch several sequences per grid step so the projection matmul's M
        # dim (TB*S) fills the MXU and per-step overhead amortizes.
        # Budget ~16 MiB for the double-buffered (TB, S, H) input block:
        # safe on v5e/v6e (128 MiB VMEM) and v7x (64 MiB VMEM per TC).
        bytes_per_seq = max(S * H * 4, 1)
        tb_vmem = max(1, (16 * 1024 * 1024) // (2 * bytes_per_seq))
        # Cap TB*S around ~2K rows: enough M to fill the MXU without
        # ballooning the (TB*S, A) intermediate in vregs.
        tb_rows = max(1, 2048 // max(S, 1))
        block_batch = max(1, min(B, tb_vmem, tb_rows))
        if block_batch < B and block_batch >= 8:
            # Sublane-aligned output blocks when tiling the batch.
            block_batch = (block_batch // 8) * 8
    TB = int(block_batch)

    grid = (pl.cdiv(B, TB),)
    kernel = partial(_attention_kernel, matmul_dtype=matmul_dtype)

    context, alphas = pl.pallas_call(
        kernel,
        out_shape=(
            jax.ShapeDtypeStruct((B, H), jnp.float32),
            jax.ShapeDtypeStruct((B, S), jnp.float32),
        ),
        grid_spec=pltpu.PrefetchScalarGridSpec(
            num_scalar_prefetch=0,
            grid=grid,
            in_specs=[
                pl.BlockSpec((TB, S, H), lambda i: (i, 0, 0)),
                pl.BlockSpec((H, A), lambda i: (0, 0)),
                pl.BlockSpec((1, A), lambda i: (0, 0)),
                pl.BlockSpec((1, A), lambda i: (0, 0)),
            ],
            out_specs=[
                pl.BlockSpec((TB, H), lambda i: (i, 0)),
                pl.BlockSpec((TB, S), lambda i: (i, 0)),
            ],
        ),
        compiler_params=pltpu.CompilerParams(
            dimension_semantics=("parallel",),
        ),
    )(x, w2, b2, u2)
    return context, alphas


def init_params(key, hidden_size, attention_size=None):
    """Deterministic parameter init mirroring the module's __init__ shapes.

    Note: the module rounds attention_size to a multiple of 8; for best TPU
    lane utilization a multiple of 128 is preferable when A is a free choice.
    """
    if attention_size is None:
        attention_size = (hidden_size + 7) // 8 * 8
    else:
        attention_size = (attention_size + 7) // 8 * 8
    k_w, k_u = jax.random.split(key)
    gain = 1.0 / math.sqrt(2.0)
    bound_w = gain * math.sqrt(6.0 / (hidden_size + attention_size))
    w_omega = jax.random.uniform(
        k_w, (hidden_size, attention_size), jnp.float32, -bound_w, bound_w
    )
    b_omega = jnp.zeros((attention_size,), jnp.float32)
    # u_omega: deterministic small random init (1-D xavier is ill-defined in torch)
    u_omega = 0.1 * jax.random.normal(k_u, (attention_size,), jnp.float32)
    return w_omega, b_omega, u_omega


def reference_forward(lstm_output, w_omega, b_omega, u_omega):
    """Pure-JAX reference matching the PyTorch semantics."""
    A = w_omega.shape[1]
    scale = math.sqrt(A)
    v = jnp.tanh(jnp.einsum("bsh,ha->bsa", lstm_output, w_omega) + b_omega) / scale
    vu = jnp.einsum("bsa,a->bs", v, u_omega)
    max_vu = jnp.max(vu, axis=1, keepdims=True)
    exp_vu = jnp.exp(vu - max_vu)
    alphas = exp_vu / (jnp.sum(exp_vu, axis=1, keepdims=True) + 1e-10)
    out = jnp.einsum("bs,bsh->bh", alphas, lstm_output)
    return out, alphas


if __name__ == "__main__":
    key = jax.random.PRNGKey(0)
    k_x, k_p = jax.random.split(key)

    batch, seq, hidden = 2, 8, 32
    lstm_output = jax.random.normal(k_x, (batch, seq, hidden), jnp.float32)
    w_omega, b_omega, u_omega = init_params(k_p, hidden)

    ref_ctx, ref_alphas = reference_forward(lstm_output, w_omega, b_omega, u_omega)

    # Default (auto-tiled: whole batch in one grid step at this size).
    context, alphas = attention_forward(lstm_output, w_omega, b_omega, u_omega)
    context = jax.block_until_ready(context)
    alphas = jax.block_until_ready(alphas)
    assert jnp.allclose(context, ref_ctx, atol=1e-5, rtol=1e-5)
    assert jnp.allclose(alphas, ref_alphas, atol=1e-5, rtol=1e-5)

    # Multi-step grid path (one batch element per step) for coverage.
    context1, alphas1 = attention_forward(
        lstm_output, w_omega, b_omega, u_omega, block_batch=1
    )
    context1 = jax.block_until_ready(context1)
    alphas1 = jax.block_until_ready(alphas1)
    assert jnp.allclose(context1, ref_ctx, atol=1e-5, rtol=1e-5)
    assert jnp.allclose(alphas1, ref_alphas, atol=1e-5, rtol=1e-5)

    print("KERNEL_OK")
</pallas_src>

<mosaic_0001>
module attributes {stable_mosaic.version = 11 : i64} {
  func.func @_attention_kernel(%arg0: i32, %arg1: memref<2x8x32xf32, #tpu.memory_space<vmem>>, %arg2: memref<32x32xf32, #tpu.memory_space<vmem>>, %arg3: memref<1x32xf32, #tpu.memory_space<vmem>>, %arg4: memref<1x32xf32, #tpu.memory_space<vmem>>, %arg5: memref<2x32xf32, #tpu.memory_space<vmem>>, %arg6: memref<2x8xf32, #tpu.memory_space<vmem>>) attributes {dimension_semantics = [#tpu.dimension_semantics<parallel>], iteration_bounds = array<i64: 1>, scalar_prefetch = 0 : i64, scratch_operands = 0 : i64, tpu.core_type = #tpu.core_type<tc>, window_params = [{transform_indices = @transform_0, window_bounds = array<i64: 2, 8, 32>}, {pipeline_mode = #tpu.pipeline_mode<synchronous>, transform_indices = @transform_1, window_bounds = array<i64: 32, 32>}, {pipeline_mode = #tpu.pipeline_mode<synchronous>, transform_indices = @transform_2, window_bounds = array<i64: 1, 32>}, {pipeline_mode = #tpu.pipeline_mode<synchronous>, transform_indices = @transform_3, window_bounds = array<i64: 1, 32>}, {transform_indices = @transform_4, window_bounds = array<i64: 2, 32>}, {transform_indices = @transform_5, window_bounds = array<i64: 2, 8>}]} {
    %c0 = arith.constant 0 : index
    %c0_0 = arith.constant 0 : index
    %c0_1 = arith.constant 0 : index
    %0 = vector.load %arg1[%c0, %c0_0, %c0_1] : memref<2x8x32xf32, #tpu.memory_space<vmem>>, vector<2x8x32xf32>
    %1 = vector.shape_cast %0 : vector<2x8x32xf32> to vector<16x32xf32>
    %c0_2 = arith.constant 0 : index
    %c0_3 = arith.constant 0 : index
    %2 = vector.load %arg2[%c0_2, %c0_3] : memref<32x32xf32, #tpu.memory_space<vmem>>, vector<32x32xf32>
    %cst = arith.constant dense<0.000000e+00> : vector<16x32xf32>
    %3 = tpu.matmul %1, %2, %cst {dimension_numbers = #tpu.dot_dimension_numbers<[1], [0], [0], [1], [0, 0, 1, 1], [], []>} : vector<16x32xf32>, vector<32x32xf32>, vector<16x32xf32> -> vector<16x32xf32>
    %c0_4 = arith.constant 0 : index
    %c0_5 = arith.constant 0 : index
    %4 = vector.load %arg3[%c0_4, %c0_5] : memref<1x32xf32, #tpu.memory_space<vmem>>, vector<1x32xf32>
    %5 = vector.broadcast %4 : vector<1x32xf32> to vector<16x32xf32>
    %6 = arith.addf %3, %5 : vector<16x32xf32>
    %7 = math.tanh %6 : vector<16x32xf32>
    %c0_6 = arith.constant 0 : index
    %c0_7 = arith.constant 0 : index
    %8 = vector.load %arg4[%c0_6, %c0_7] : memref<1x32xf32, #tpu.memory_space<vmem>>, vector<1x32xf32>
    %9 = vector.broadcast %8 : vector<1x32xf32> to vector<16x32xf32>
    %10 = arith.mulf %7, %9 : vector<16x32xf32>
    %cst_8 = arith.constant dense<0.000000e+00> : vector<16xf32>
    %11 = vector.multi_reduction <add>, %10, %cst_8 [1] : vector<16x32xf32> to vector<16xf32>
    %12 = vector.shape_cast %11 : vector<16xf32> to vector<16x1xf32>
    %13 = vector.shape_cast %12 : vector<16x1xf32> to vector<2x8x1xf32>
    %cst_9 = arith.constant dense<0xFF800000> : vector<2x1xf32>
    %14 = vector.multi_reduction <maximumf>, %13, %cst_9 [1] : vector<2x8x1xf32> to vector<2x1xf32>
    %15 = vector.shape_cast %14 : vector<2x1xf32> to vector<2x1x1xf32>
    %16 = vector.broadcast %15 : vector<2x1x1xf32> to vector<2x8x1xf32>
    %17 = arith.subf %13, %16 : vector<2x8x1xf32>
    %18 = math.exp %17 : vector<2x8x1xf32>
    %cst_10 = arith.constant dense<0.000000e+00> : vector<2x1xf32>
    %19 = vector.multi_reduction <add>, %18, %cst_10 [1] : vector<2x8x1xf32> to vector<2x1xf32>
    %20 = vector.shape_cast %19 : vector<2x1xf32> to vector<2x1x1xf32>
    %cst_11 = arith.constant 1.000000e-10 : f32
    %21 = vector.broadcast %cst_11 : f32 to vector<2x1x1xf32>
    %22 = arith.addf %20, %21 : vector<2x1x1xf32>
    %cst_12 = arith.constant 1.000000e+00 : f32
    %23 = vector.broadcast %cst_12 : f32 to vector<2x1x1xf32>
    %24 = arith.divf %23, %22 : vector<2x1x1xf32>
    %25 = vector.broadcast %24 : vector<2x1x1xf32> to vector<2x8x1xf32>
    %26 = arith.mulf %18, %25 : vector<2x8x1xf32>
    %27 = vector.broadcast %26 : vector<2x8x1xf32> to vector<2x8x32xf32>
    %28 = arith.mulf %0, %27 : vector<2x8x32xf32>
    %cst_13 = arith.constant dense<0.000000e+00> : vector<2x32xf32>
    %29 = vector.multi_reduction <add>, %28, %cst_13 [1] : vector<2x8x32xf32> to vector<2x32xf32>
    %c0_14 = arith.constant 0 : index
    %c0_15 = arith.constant 0 : index
    %30 = vector.load %arg5[%c0_14, %c0_15] : memref<2x32xf32, #tpu.memory_space<vmem>>, vector<2x32xf32>
    tpu.vector_store %arg5[%c0_14, %c0_15], %29 {strides = array<i32>} : memref<2x32xf32, #tpu.memory_space<vmem>>, vector<2x32xf32>,
    %31 = vector.shape_cast %26 : vector<2x8x1xf32> to vector<2x8xf32>
    %c0_16 = arith.constant 0 : index
    %c0_17 = arith.constant 0 : index
    %32 = vector.load %arg6[%c0_16, %c0_17] : memref<2x8xf32, #tpu.memory_space<vmem>>, vector<2x8xf32>
    tpu.vector_store %arg6[%c0_16, %c0_17], %31 {strides = array<i32>} : memref<2x8xf32, #tpu.memory_space<vmem>>, vector<2x8xf32>,
    return
  }
  func.func @transform_0(%arg0: i32) -> (i32, i32, i32) {
    %c0_i32 = arith.constant 0 : i32
    %c0_i32_0 = arith.constant 0 : i32
    %c0_i32_1 = arith.constant 0 : i32
    return %arg0, %c0_i32, %c0_i32_0 : i32, i32, i32
  }
  func.func @transform_1(%arg0: i32) -> (i32, i32) {
    %c0_i32 = arith.constant 0 : i32
    %c0_i32_0 = arith.constant 0 : i32
    %c0_i32_1 = arith.constant 0 : i32
    return %c0_i32, %c0_i32_0 : i32, i32
  }
  func.func @transform_2(%arg0: i32) -> (i32, i32) {
    %c0_i32 = arith.constant 0 : i32
    %c0_i32_0 = arith.constant 0 : i32
    %c0_i32_1 = arith.constant 0 : i32
    return %c0_i32, %c0_i32_0 : i32, i32
  }
  func.func @transform_3(%arg0: i32) -> (i32, i32) {
    %c0_i32 = arith.constant 0 : i32
    %c0_i32_0 = arith.constant 0 : i32
    %c0_i32_1 = arith.constant 0 : i32
    return %c0_i32, %c0_i32_0 : i32, i32
  }
  func.func @transform_4(%arg0: i32) -> (i32, i32) {
    %c0_i32 = arith.constant 0 : i32
    %c0_i32_0 = arith.constant 0 : i32
    return %arg0, %c0_i32 : i32, i32
  }
  func.func @transform_5(%arg0: i32) -> (i32, i32) {
    %c0_i32 = arith.constant 0 : i32
    %c0_i32_0 = arith.constant 0 : i32
    return %arg0, %c0_i32 : i32, i32
  }
}

</mosaic_0001>

<bundles_post_ra>
// kernel: tpu_custom_call.1
= control target key start
LH: loop header
LB: loop body
LE: loop exit
PB: predicated region body
PF: predicated region fallthrough
CT: control target
= control target key end

     0   :  { %11 = vsyncpa [#allocation3], 0  ;;  %s517_s0 = inlined_call_operand.hbm [shape: f32[2,8,32], index: 0, kind: input, shape index: {}]   ;;  %s518_s1 = inlined_call_operand.hbm [shape: f32[32,32], index: 1, kind: input, shape index: {}]   ;;  %s519_s2 = inlined_call_operand.vmem [shape: f32[1,32], index: 2, kind: input, shape index: {}]   ;;  %s520_s3 = inlined_call_operand.vmem [shape: f32[1,32], index: 3, kind: input, shape index: {}]   ;;  %s521_s4 = inlined_call_operand.hbm [shape: f32[2,32], index: 4, kind: output, shape index: {0}]   ;;  %s522_s5 = inlined_call_operand.hbm [shape: f32[2,8], index: 5, kind: output, shape index: {1}]  }
   0x1   :  { %12 = vsyncpa [#allocation6], 0 }
   0x2   :  { %13 = vsyncpa [#allocation4], 0 }
   0x3   :  { %14 = vsyncpa [#allocation9], 0  ;;  %s411_s18 = smov [#allocation2]   ;;  %s315_s22 = scalar_lea.hbm %s517_s0, 256 }
   0x4   :  { %s20_s19 = sshll.u32 %s411_s18, 4  ;;  %p316_p0 = scmp.ne.s32.totalorder %s517_s0, %s315_s22  ;;  %s21_s19 = int_to_ptr.vmem [resolvable:$true] %s20_s19 }
   0x5   :  { %p319_p1 = scmp.lt.u32.totalorder %s315_s22, %s517_s0 }
   0x7   :  { %p321_p2 = pnand %p319_p1, %p316_p0 }
   0x9   :  { %324 = shalt.err (!%p321_p2)
}
   0xa   :  { %s325_s27 = scalar_lea.vmem %s21_s19, 256  ;;  %p330_p4 = scmp.lt.s32.totalorder %s21_s19, %s21_s19 }
   0xb   :  { %p326_p3 = scmp.ne.s32.totalorder %s21_s19, %s325_s27  ;;  %p331_p5 = scmp.lt.s32.totalorder %s325_s27, %s325_s27 }
   0xd   :  { %p332_p6 = por %p331_p5, %p330_p4 }
   0xf   :  { %p333_p7 = pnand %p332_p6, %p326_p3 }
  0x11   :  { %336 = shalt.err (!%p333_p7)
}
  0x12   :  { %s412_s28 = smov 128   ;;  %s413_s29 = smov 8  }
  0x13   :  { %26 = dma.hbm_to_vmem [thread:$0]  %s517_s0, 256, %s21_s19, [#allocation3], %s412_s28, %s412_s28, %s413_s29  }
  0x14   :  { %s414_s7 = smov [#allocation5]   ;;  %s337_s11 = scalar_lea.hbm %s518_s1, 512 }
  0x15   :  { %s32_s8 = sshll.u32 %s414_s7, 4  ;;  %p338_p8 = scmp.ne.s32.totalorder %s518_s1, %s337_s11  ;;  %s33_s8 = int_to_ptr.vmem [resolvable:$true] %s32_s8 }
  0x16   :  { %p341_p9 = scmp.lt.u32.totalorder %s337_s11, %s518_s1 }
  0x18   :  { %p343_p10 = pnand %p341_p9, %p338_p8 }
  0x1a   :  { %346 = shalt.err (!%p343_p10)
}
  0x1b   :  { %s347_s16 = scalar_lea.vmem %s33_s8, 512  ;;  %p352_p12 = scmp.lt.s32.totalorder %s33_s8, %s33_s8 }
  0x1c   :  { %p348_p11 = scmp.ne.s32.totalorder %s33_s8, %s347_s16  ;;  %p353_p13 = scmp.lt.s32.totalorder %s347_s16, %s347_s16 }
  0x1e   :  { %p354_p0 = por %p353_p13, %p352_p12 }
  0x20   :  { %p355_p1 = pnand %p354_p0, %p348_p11 }
  0x22   :  { %358 = shalt.err (!%p355_p1)
}
  0x23   :  { %38 = dma.hbm_to_vmem [thread:$0]  %s518_s1, 512, %s33_s8, [#allocation6], %s412_s28, %s412_s28, %s413_s29  }
  0x24   :  { %403 = dma.done.wait [#allocation3], 256  }
  0x25   :  { %404 = vsyncadd [#allocation3], 4294967040 }
  0x26   :  { %405 = dma.done.wait [#allocation6], 512  }
  0x27   :  { %406 = vsyncadd [#allocation6], 4294966784  ;;  %vm62_vm0 = vcmask 261120   ;;  %v51_v0 = vld [vmem:[#allocation5] sm:$0xff]  ;;  %v52_v1 = vld [vmem:[#allocation5 + $0x8] sm:$0xff]  ;;  %v224_v54 = vlaneseq  ;;  %vm217_vm1 = vcmask 1041409  }
  0x28   :  { %v53_v2 = vld [vmem:[#allocation5 + $0x10] sm:$0xff]  ;;  %v289_v3 = vpack.c.bf16 %v52_v1, %v51_v0  ;;  %v54_v4 = vld [vmem:[#allocation5 + $0x18] sm:$0xff]  ;;  %vm236_vm2 = vcmask 58368  }
  0x29   :  { %v471_v5 = vld [vmem:[#allocation2] sm:$0xff]  ;;  %v293_v6 = vpack.c.bf16 %v54_v4, %v53_v2  ;;  %v475_v7 = vld [vmem:[#allocation2 + $0x8] sm:$0xff]  ;;  %v225_v55 = vand.u32 127, %v224_v54  ;;  %v227_v56 = vshrl.u32 %v224_v54, 7 }
  0x2a   :  { %286 = vmatprep.mubr.msk.f32.mxu0 %vm62_vm0, %v471_v5  ;;  %290 = vmatprep.subr.bf16.mxu0 %v289_v3  ;;  %v268_v8 = vld [vmem:[%s519_s2] ss:$0 sm:$0xff]  ;;  %s415_s2 = smov [#allocation8]  }
  0x2b   :  { %292 = vmatpush3.bf16.msra.mxu0 %v289_v3  ;;  %v271_v13 = vld [vmem:[%s520_s3] ss:$0 sm:$0xff]  ;;  %v228_v60 = vsub.s32 %v225_v55, %v227_v56  ;;  %s254_s3 = sshll.u32 %s415_s2, 4  ;;  %s255_s3 = int_to_ptr.vmem [resolvable:$true] %s254_s3 }
  0x2c   :  { %294 = vmatprep.subr.bf16.mxu0 %v293_v6  ;;  %s359_s21 = scalar_lea.vmem %s255_s3, 32  ;;  %p364_p3 = scmp.lt.s32.totalorder %s255_s3, %s255_s3 }
  0x2d   :  { %p360_p2 = scmp.ne.s32.totalorder %s255_s3, %s359_s21  ;;  %p365_p4 = scmp.lt.s32.totalorder %s359_s21, %s359_s21 }
  0x2f   :  { %296 = vmatpush3.bf16.msra.mxu0 %v293_v6  ;;  %p366_p5 = por %p365_p4, %p364_p3 }
  0x31   :  { %p367_p6 = pnand %p366_p5, %p360_p2 }
  0x32   :  { %287 = vmatmul.mubr.msk.f32.vlgmr.msra.gmra.mrb[0].mxu0 %vm62_vm0, %v475_v7 }
 0x105   :  { %v288_v9 = vpop.f32.mrb[0].mxu0 }
 0x106   :  { %v141_v10 = vadd.f32 %v288_v9, %v268_v8  ;;  %v135_v11 = vpop.f32.mrb[1].mxu0 }
 0x107   :  { %v136_v12 = vadd.f32 %v268_v8, %v135_v11 }
 0x108   :  { %303 = vtanh.f32 %v141_v10 }
 0x109   :  { %305 = vtanh.f32 %v136_v12 }
 0x112   :  { %v304_v14 = vpop.eup %303 }
 0x113   :  { %v306_v15 = vpop.eup %305  ;;  %v154_v18 = vmul.f32 %v304_v14, %v271_v13 }
 0x114   :  { %v153_v16 = vmul.f32 %v306_v15, %v271_v13 }
 0x115   :  { %v158_v19 = vsel %vm62_vm0, %v154_v18, 0.0 }
 0x116   :  { %v155_v17 = vsel %vm62_vm0, %v153_v16, 0.0 }
 0x117   :  { %156 = vadd.xlane.f32.xlu0 %v155_v17 }
 0x11b   :  { %159 = vadd.xlane.f32.xlu0 %v158_v19 }
 0x1a4   :  { %v157_v20 = vpop.xlane.xlu0 %156 }
 0x1a5   :  { %v161_v21 = vrot.slane %v157_v20, 4 }
 0x1a7   :  { %v162_v22 = vmax.f32 %v157_v20, %v161_v21 }
 0x1a8   :  { %v160_v23 = vpop.xlane.xlu0 %159 }
 0x1a9   :  { %v163_v24 = vrot.slane %v162_v22, 2  ;;  %v167_v25 = vrot.slane %v160_v23, 4 }
 0x1ab   :  { %v164_v26 = vmax.f32 %v162_v22, %v163_v24  ;;  %v168_v27 = vmax.f32 %v160_v23, %v167_v25 }
 0x1ad   :  { %v165_v28 = vrot.slane %v164_v26, 1  ;;  %v169_v29 = vrot.slane %v168_v27, 2 }
 0x1af   :  { %v166_v30 = vmax.f32 %v164_v26, %v165_v28  ;;  %v170_v31 = vmax.f32 %v168_v27, %v169_v29 }
 0x1b1   :  { %v173_v32 = vsub.f32 %v157_v20, %v166_v30  ;;  %v171_v33 = vrot.slane %v170_v31, 1 }
 0x1b3   :  { %v175_v34 = vmul.f32 1.442695, %v173_v32  ;;  %v172_v35 = vmax.f32 %v170_v31, %v171_v33 }
 0x1b5   :  { %307 = vpow2.f32 %v175_v34  ;;  %v174_v36 = vsub.f32 %v160_v23, %v172_v35 }
 0x1b7   :  { %v177_v37 = vmul.f32 1.442695, %v174_v36 }
 0x1b9   :  { %309 = vpow2.f32 %v177_v37 }
 0x1bf   :  { %v308_v38 = vpop.eup %307 }
 0x1c0   :  { %v179_v39 = vrot.slane %v308_v38, 4 }
 0x1c2   :  { %v180_v40 = vadd.f32 %v308_v38, %v179_v39 }
 0x1c3   :  { %v310_v41 = vpop.eup %309 }
 0x1c4   :  { %v181_v42 = vrot.slane %v180_v40, 2  ;;  %v185_v43 = vrot.slane %v310_v41, 4 }
 0x1c6   :  { %v182_v44 = vadd.f32 %v181_v42, %v180_v40  ;;  %v186_v45 = vadd.f32 %v310_v41, %v185_v43 }
 0x1c8   :  { %v187_v46 = vrot.slane %v186_v45, 2  ;;  %v183_v47 = vrot.slane %v182_v44, 1 }
 0x1ca   :  { %v188_v48 = vadd.f32 %v187_v46, %v186_v45  ;;  %v184_v49 = vadd.f32 %v183_v47, %v182_v44 }
 0x1cc   :  { %v189_v50 = vrot.slane %v188_v48, 1  ;;  %v191_v51 = vadd.f32 1e-10, %v184_v49 }
 0x1ce   :  { %v190_v52 = vadd.f32 %v189_v50, %v188_v48  ;;  %311 = vrcp.f32 %v191_v51 }
 0x1d0   :  { %v192_v53 = vadd.f32 1e-10, %v190_v52 }
 0x1d2   :  { %313 = vrcp.f32 %v192_v53 }
 0x1d8   :  { %v312_v57 = vpop.eup %311 }
 0x1d9   :  { %v197_v58 = vmul.f32 %v312_v57, %v308_v38 }
 0x1db   :  { %v199_v59 = vmul.f32 %v197_v58, %v471_v5  ;;  %v229_v2 = vrot.slane %v197_v58, %v228_v60 }
 0x1dc   :  { %v314_v61 = vpop.eup %313 }
 0x1dd   :  { %v198_v62 = vmul.f32 %v314_v61, %v310_v41  ;;  %v201_v63 = vsel %vm62_vm0, %v199_v59, 0.0 }
 0x1de   :  { %v202_v0 = vrot.slane %v201_v63, 4 }
 0x1df   :  { %v200_v1 = vmul.f32 %v198_v62, %v475_v7  ;;  %v233_v3 = vrot.slane %v198_v62, %v228_v60 }
 0x1e0   :  { %v203_v4 = vadd.f32 %v202_v0, %v201_v63 }
 0x1e1   :  { %v208_v6 = vsel %vm62_vm0, %v200_v1, 0.0  ;;  %v234_v5 = vsel %vm217_vm1, %v233_v3, %v229_v2 }
 0x1e2   :  { %v204_v8 = vrot.slane %v203_v4, 2  ;;  %v209_v9 = vrot.slane %v208_v6, 4  ;;  %237 = vst.msk [vmem:[#allocation8] sm:$0x3] %vm236_vm2, %v234_v5 }
 0x1e3   :  { %370 = shalt.err (!%p367_p6)
}
 0x1e4   :  { %s371_s24 = scalar_lea.hbm %s522_s5, 32 }
 0x1e5   :  { %p372_p7 = scmp.ne.s32.totalorder %s522_s5, %s371_s24  ;;  %p375_p8 = scmp.lt.u32.totalorder %s371_s24, %s522_s5 }
 0x1e7   :  { %p377_p9 = pnand %p375_p8, %p372_p7 }
 0x1e9   :  { %380 = shalt.err (!%p377_p9)
}
 0x1ea   :  { %257 = dma.vmem_to_hbm [thread:$0]  %s255_s3, 32, %s522_s5, [#allocation9]   ;;  %v205_v7 = vadd.f32 %v204_v8, %v203_v4  ;;  %v210_v10 = vadd.f32 %v209_v9, %v208_v6  ;;  %vm220_vm3 = vcmask 254976  }
 0x1eb   :  { %s416_s6 = smov [#allocation7]  }
 0x1ec   :  { %v211_v11 = vrot.slane %v210_v10, 2  ;;  %v206_v12 = vrot.slane %v205_v7, 1  ;;  %s244_s7 = sshll.u32 %s416_s6, 4  ;;  %s245_s7 = int_to_ptr.vmem [resolvable:$true] %s244_s7 }
 0x1ed   :  { %s381_s8 = scalar_lea.vmem %s245_s7, 32  ;;  %p386_p11 = scmp.lt.s32.totalorder %s245_s7, %s245_s7 }
 0x1ee   :  { %v212_v13 = vadd.f32 %v211_v11, %v210_v10  ;;  %v207_v15 = vadd.f32 %v206_v12, %v205_v7  ;;  %p382_p10 = scmp.ne.s32.totalorder %s245_s7, %s381_s8  ;;  %p387_p12 = scmp.lt.s32.totalorder %s381_s8, %s381_s8 }
 0x1f0   :  { %v213_v14 = vrot.slane %v212_v13, 1  ;;  %p388_p13 = por %p387_p12, %p386_p11 }
 0x1f2   :  { %v214_v16 = vadd.f32 %v213_v14, %v212_v13  ;;  %p389_p0 = pnand %p388_p13, %p382_p10 }
 0x1f4   :  { %v218_v17 = vsel %vm217_vm1, %v214_v16, %v207_v15 }
 0x1f5   :  { %221 = vst.msk [vmem:[#allocation7] sm:$0x3] %vm220_vm3, %v218_v17 }
 0x1f6   :  { %392 = shalt.err (!%p389_p0)
}
 0x1f7   :  { %s393_s10 = scalar_lea.hbm %s521_s4, 32 }
 0x1f8   :  { %p394_p1 = scmp.ne.s32.totalorder %s521_s4, %s393_s10  ;;  %p397_p2 = scmp.lt.u32.totalorder %s393_s10, %s521_s4 }
 0x1fa   :  { %p399_p3 = pnand %p397_p2, %p394_p1 }
 0x1fc   :  { %402 = shalt.err (!%p399_p3)
}
 0x1fd   :  { %247 = dma.vmem_to_hbm [thread:$0]  %s245_s7, 32, %s521_s4, [#allocation4]  }
 0x1fe   :  { %407 = dma.done.wait [#allocation4], 32  }
 0x1ff   :  { %408 = vsyncadd [#allocation4], 4294967264 }
 0x200   :  { %409 = dma.done.wait [#allocation9], 32  }
 0x201   :  { %410 = vsyncadd [#allocation9], 4294967264 }
 0x202   :  { %264 = vsyncpa [#allocation3], 1 }
 0x203   :  { %265 = vsyncpa [#allocation6], 1 }
 0x204   :  { %266 = vsyncpa [#allocation4], 1 }
 0x205   :  { %267 = vsyncpa [#allocation9], 1 }

</bundles_post_ra>
